<compile_context>
chip_gen: v7x
topology: tpu7x:2x2x1
jax: 0.10.0
libtpu: 0.0.40
codegen_flags: <defaults>
</compile_context>

<pallas_src>
import math

import jax
import jax.numpy as jnp
from jax.experimental import pallas as pl
from jax.experimental.pallas import tpu as pltpu


def _attention_kernel(hp_ref, enc_ref, we_ref, v_ref, out_ref):
    # hp_ref:  (Bt, H)    precomputed hidden @ W_h^T + b   (float32)
    # enc_ref: (Bt, T, H) encoder outputs tile (streaming dtype)
    # we_ref:  (H, H)     W[:, H:].T  (so enc @ we == enc @ W_e^T)
    # v_ref:   (1, H)     scoring vector (float32)
    # out_ref: (Bt, T)    softmax over T (float32)
    bt, t, h = enc_ref.shape

    # One tall MXU matmul: (Bt*T, H) x (H, H) with f32 accumulation.
    # The (Bt, T) -> Bt*T collapse is a pure layout no-op when T % 8 == 0.
    # TODO(synk): for T % 8 != 0 this collapse is a sublane relayout copy; a
    # T-chunked inner loop with an online softmax would avoid it (and also
    # bound VMEM for very long T).
    enc2 = enc_ref[...].reshape(bt * t, h)
    ep = jnp.dot(enc2, we_ref[...], preferred_element_type=jnp.float32)
    ep = ep.reshape(bt, t, h)

    # energy = tanh(W_e part + (W_h part + bias)), broadcast over T.
    # All post-matmul math stays f32 on every generation (v5e's VPU/EUP have
    # no bf16 path anyway).
    energy = jnp.tanh(ep + hp_ref[...][:, None, :])

    # v projection as VPU multiply + XLU lane reduce (keeps the MXU free).
    scores = jnp.sum(energy * v_ref[...], axis=-1)            # (Bt, T)

    # Numerically stable softmax over T (lane axis).
    m = jnp.max(scores, axis=-1, keepdims=True)
    p = jnp.exp(scores - m)
    denom = jnp.sum(p, axis=-1, keepdims=True)
    # Exact reciprocal keeps 1e-5 fidelity vs. the reference (approx=True would
    # move the divide to the EUP at ~1e-4 relative error).
    out_ref[...] = (p * pl.reciprocal(denom)).astype(out_ref.dtype)


def _round_up(x, m):
    return ((x + m - 1) // m) * m


def _vmem_capacity_bytes():
    """Per-core VMEM capacity; conservative fallback if it cannot be queried."""
    try:
        cap = int(getattr(pltpu.get_tpu_info(), "vmem_capacity_bytes", 0) or 0)
        if cap > 0:
            return cap
    except Exception:
        pass
    return 64 * 2 ** 20            # v7x per-core VMEM (smallest current gen)


def _tile_footprint(bt, T, H, enc_itemsize):
    """Approx. VMEM bytes one grid step needs for a batch tile of `bt` rows."""
    return (bt * T * H * (2 * enc_itemsize + 8)   # 2x enc tile + f32 ep/energy
            + 2 * bt * H * 4                      # hidden-projection tiles
            + 2 * bt * T * 4)                     # output tiles


def _choose_batch_tile(B, T, H, enc_itemsize, const_bytes, tile_budget):
    """Per-step batch tile Bt: the biggest tile that fits the VMEM budget."""
    if B <= 8:
        return B                                  # single full-batch block
    bt = min((B // 8) * 8, 1024)                  # sublane-clean starting point
    while bt > 8 and _tile_footprint(bt, T, H, enc_itemsize) + const_bytes > tile_budget:
        bt -= 8
    # Prefer >= 4 grid steps (>= 2 per v7x TensorCore) so every core overlaps
    # DMA with compute; only when the batch is big enough to afford it.
    if B >= 32:
        while bt > 8 and -(-B // bt) < 4:
            bt -= 8
    return bt


def attention_forward(hidden, encoder_outputs, W, b, v, *, stream_dtype=None):
    """hidden: (B, H); encoder_outputs: (B, T, H); W: (H, 2H); b: (H,); v: (H,).

    Returns (B, 1, T) attention weights (softmax over T).
    `stream_dtype` (e.g. jnp.bfloat16) optionally casts the streamed encoder
    tensor and W_e to halve HBM traffic; accumulation and softmax stay f32.
    """
    B, T, H = encoder_outputs.shape
    assert hidden.shape == (B, H)
    assert W.shape == (H, 2 * H)

    enc = encoder_outputs if stream_dtype is None else encoder_outputs.astype(stream_dtype)
    enc_isz = jnp.dtype(enc.dtype).itemsize

    # Hoisted hidden projection: one (B,H)x(H,H) XLA matmul, in f32.
    hp = (hidden.astype(jnp.float32) @ W[:, :H].T.astype(jnp.float32)
          + b.astype(jnp.float32)[None, :])                      # (B, H)
    we_t = W[:, H:].T.astype(enc.dtype)                          # (H, H)
    v2 = v.reshape(1, H).astype(jnp.float32)                     # (1, H)
    we_isz = jnp.dtype(we_t.dtype).itemsize
    const_bytes = H * H * we_isz + H * 4                         # resident weights

    # Generation-aware VMEM budget: 3/4 of physical per-core VMEM (48 MiB on
    # v7x, 96 MiB on v5e/v6e) with extra headroom for Mosaic internal scratch.
    capacity = _vmem_capacity_bytes()
    vmem_cap = (3 * capacity) // 4
    tile_budget = (3 * vmem_cap) // 4

    Bt = _choose_batch_tile(B, T, H, enc_isz, const_bytes, tile_budget)
    grid = -(-B // Bt)      # partial last block instead of padding enc in HBM

    est = _tile_footprint(Bt, T, H, enc_isz) + const_bytes
    vmem_limit = int(min(vmem_cap, max(32 * 2 ** 20, 2 * est)))
    # TODO(synk): if even Bt=8 overflows the budget (very long T), add a T tile
    # axis with an online softmax instead of holding (Bt, T, H) in VMEM.

    cost = pl.CostEstimate(
        flops=2 * B * T * H * H + 4 * B * T * H,
        transcendentals=B * T * H + B * T,              # tanh + exp
        bytes_accessed=B * T * H * enc_isz + B * H * 4 + const_bytes + B * T * 4,
    )

    def build(single_buffer_weights):
        if single_buffer_weights:
            we_spec = pl.BlockSpec((H, H), lambda i: (0, 0),
                                   pipeline_mode=pl.Buffered(1))
            v_spec = pl.BlockSpec((1, H), lambda i: (0, 0),
                                  pipeline_mode=pl.Buffered(1))
        else:
            we_spec = pl.BlockSpec((H, H), lambda i: (0, 0))
            v_spec = pl.BlockSpec((1, H), lambda i: (0, 0))
        return pl.pallas_call(
            _attention_kernel,
            out_shape=jax.ShapeDtypeStruct((B, T), jnp.float32),
            grid=(grid,),
            in_specs=[
                pl.BlockSpec((Bt, H), lambda i: (i, 0)),        # hidden proj
                pl.BlockSpec((Bt, T, H), lambda i: (i, 0, 0)),  # encoder outputs
                we_spec,                                        # W_e^T (resident)
                v_spec,                                         # v     (resident)
            ],
            out_specs=pl.BlockSpec((Bt, T), lambda i: (i, 0)),  # dense (Bt,T) slab
            compiler_params=pltpu.CompilerParams(
                dimension_semantics=("parallel",),
                vmem_limit_bytes=vmem_limit,
            ),
            cost_estimate=cost,
        )

    try:
        out = build(True)(hp, enc, we_t, v2)
    except Exception:
        # Fallback for jax versions that reject pl.Buffered(1) on pallas_call
        # BlockSpecs -- functionally identical, weights just double-buffered.
        out = build(False)(hp, enc, we_t, v2)

    # NOTE: if T is large and not a multiple of 128 the (Bt, T) store uses
    # masked vst; output traffic is ~1/H of the enc read so it is left as-is.
    return out[:, None, :]                         # (B, 1, T)


def attention_reference(hidden, encoder_outputs, W, b, v):
    """Pure-JAX reference replicating the PyTorch forward exactly."""
    B, T, H = encoder_outputs.shape
    h = jnp.broadcast_to(hidden[:, None, :], (B, T, H))
    x = jnp.concatenate([h, encoder_outputs], axis=2)         # (B, T, 2H)
    energy = jnp.tanh(x @ W.T + b)                             # (B, T, H)
    scores = jnp.einsum("h,bth->bt", v, energy)[:, None, :]    # (B, 1, T)
    return jax.nn.softmax(scores, axis=2)


if __name__ == "__main__":
    # --- primary check: small shapes matching the module ---------------------
    B, T, H = 2, 8, 32

    key = jax.random.PRNGKey(0)
    k_hid, k_enc, k_w, k_b, k_v = jax.random.split(key, 5)

    # Deterministic parameter init matching the PyTorch module's __init__:
    #   nn.Linear(2H, H): weight/bias ~ U(-1/sqrt(2H), 1/sqrt(2H))
    #   v ~ U(-1/sqrt(H), 1/sqrt(H))
    k_lin = 1.0 / math.sqrt(2 * H)
    W = jax.random.uniform(k_w, (H, 2 * H), jnp.float32, -k_lin, k_lin)
    b = jax.random.uniform(k_b, (H,), jnp.float32, -k_lin, k_lin)
    stdv = 1.0 / math.sqrt(H)
    v = jax.random.uniform(k_v, (H,), jnp.float32, -stdv, stdv)

    hidden = jax.random.normal(k_hid, (B, H), jnp.float32)
    encoder_outputs = jax.random.normal(k_enc, (B, T, H), jnp.float32)

    out = jax.block_until_ready(attention_forward(hidden, encoder_outputs, W, b, v))
    ref = attention_reference(hidden, encoder_outputs, W, b, v)
    assert out.shape == (B, 1, T)
    assert jnp.allclose(out, ref, atol=1e-5, rtol=1e-5)
    assert jnp.allclose(jnp.sum(out, axis=2), 1.0, atol=1e-5)

    # --- secondary check: multi-step grid with a partial last batch block ----
    B2, T2, H2 = 20, 16, 128
    k2 = jax.random.PRNGKey(1)
    kh2, ke2, kw2, kb2, kv2 = jax.random.split(k2, 5)
    k_lin2 = 1.0 / math.sqrt(2 * H2)
    W2 = jax.random.uniform(kw2, (H2, 2 * H2), jnp.float32, -k_lin2, k_lin2)
    b2 = jax.random.uniform(kb2, (H2,), jnp.float32, -k_lin2, k_lin2)
    stdv2 = 1.0 / math.sqrt(H2)
    v2 = jax.random.uniform(kv2, (H2,), jnp.float32, -stdv2, stdv2)
    hidden2 = jax.random.normal(kh2, (B2, H2), jnp.float32)
    enc2 = jax.random.normal(ke2, (B2, T2, H2), jnp.float32)

    out2 = jax.block_until_ready(attention_forward(hidden2, enc2, W2, b2, v2))
    ref2 = attention_reference(hidden2, enc2, W2, b2, v2)
    assert out2.shape == (B2, 1, T2)
    assert jnp.allclose(out2, ref2, atol=2e-5, rtol=2e-5)
    assert jnp.allclose(jnp.sum(out2, axis=2), 1.0, atol=1e-5)

    print("KERNEL_OK")
</pallas_src>

<mosaic_0001>
module attributes {stable_mosaic.version = 11 : i64} {
  func.func @_attention_kernel(%arg0: i32, %arg1: memref<2x32xf32, #tpu.memory_space<vmem>>, %arg2: memref<2x8x32xf32, #tpu.memory_space<vmem>>, %arg3: memref<32x32xf32, #tpu.memory_space<vmem>>, %arg4: memref<1x32xf32, #tpu.memory_space<vmem>>, %arg5: memref<2x8xf32, #tpu.memory_space<vmem>>) attributes {dimension_semantics = [#tpu.dimension_semantics<parallel>], iteration_bounds = array<i64: 1>, scalar_prefetch = 0 : i64, scratch_operands = 0 : i64, tpu.core_type = #tpu.core_type<tc>, window_params = [{transform_indices = @transform_0, window_bounds = array<i64: 2, 32>}, {transform_indices = @transform_1, window_bounds = array<i64: 2, 8, 32>}, {pipeline_mode = #tpu.pipeline_mode<synchronous>, transform_indices = @transform_2, window_bounds = array<i64: 32, 32>}, {pipeline_mode = #tpu.pipeline_mode<synchronous>, transform_indices = @transform_3, window_bounds = array<i64: 1, 32>}, {transform_indices = @transform_4, window_bounds = array<i64: 2, 8>}]} {
    %c0 = arith.constant 0 : index
    %c0_0 = arith.constant 0 : index
    %c0_1 = arith.constant 0 : index
    %0 = vector.load %arg2[%c0, %c0_0, %c0_1] : memref<2x8x32xf32, #tpu.memory_space<vmem>>, vector<2x8x32xf32>
    %1 = vector.shape_cast %0 : vector<2x8x32xf32> to vector<16x32xf32>
    %c0_2 = arith.constant 0 : index
    %c0_3 = arith.constant 0 : index
    %2 = vector.load %arg3[%c0_2, %c0_3] : memref<32x32xf32, #tpu.memory_space<vmem>>, vector<32x32xf32>
    %cst = arith.constant dense<0.000000e+00> : vector<16x32xf32>
    %3 = tpu.matmul %1, %2, %cst {dimension_numbers = #tpu.dot_dimension_numbers<[1], [0], [0], [1], [0, 0, 1, 1], [], []>} : vector<16x32xf32>, vector<32x32xf32>, vector<16x32xf32> -> vector<16x32xf32>
    %4 = vector.shape_cast %3 : vector<16x32xf32> to vector<2x8x32xf32>
    %c0_4 = arith.constant 0 : index
    %c0_5 = arith.constant 0 : index
    %5 = vector.load %arg1[%c0_4, %c0_5] : memref<2x32xf32, #tpu.memory_space<vmem>>, vector<2x32xf32>
    %6 = vector.shape_cast %5 : vector<2x32xf32> to vector<2x1x32xf32>
    %7 = vector.broadcast %6 : vector<2x1x32xf32> to vector<2x8x32xf32>
    %8 = arith.addf %4, %7 : vector<2x8x32xf32>
    %9 = math.tanh %8 : vector<2x8x32xf32>
    %c0_6 = arith.constant 0 : index
    %c0_7 = arith.constant 0 : index
    %10 = vector.load %arg4[%c0_6, %c0_7] : memref<1x32xf32, #tpu.memory_space<vmem>>, vector<1x32xf32>
    %11 = vector.shape_cast %10 : vector<1x32xf32> to vector<1x1x32xf32>
    %12 = vector.broadcast %11 : vector<1x1x32xf32> to vector<2x8x32xf32>
    %13 = arith.mulf %9, %12 : vector<2x8x32xf32>
    %cst_8 = arith.constant dense<0.000000e+00> : vector<2x8xf32>
    %14 = vector.multi_reduction <add>, %13, %cst_8 [2] : vector<2x8x32xf32> to vector<2x8xf32>
    %cst_9 = arith.constant dense<0xFF800000> : vector<2xf32>
    %15 = vector.multi_reduction <maximumf>, %14, %cst_9 [1] : vector<2x8xf32> to vector<2xf32>
    %16 = vector.shape_cast %15 : vector<2xf32> to vector<2x1xf32>
    %17 = vector.broadcast %16 : vector<2x1xf32> to vector<2x8xf32>
    %18 = arith.subf %14, %17 : vector<2x8xf32>
    %19 = math.exp %18 : vector<2x8xf32>
    %cst_10 = arith.constant dense<0.000000e+00> : vector<2xf32>
    %20 = vector.multi_reduction <add>, %19, %cst_10 [1] : vector<2x8xf32> to vector<2xf32>
    %21 = vector.shape_cast %20 : vector<2xf32> to vector<2x1xf32>
    %22 = tpu.reciprocal %21 : vector<2x1xf32> -> vector<2x1xf32>
    %23 = vector.broadcast %22 : vector<2x1xf32> to vector<2x8xf32>
    %24 = arith.mulf %19, %23 : vector<2x8xf32>
    %c0_11 = arith.constant 0 : index
    %c0_12 = arith.constant 0 : index
    %25 = vector.load %arg5[%c0_11, %c0_12] : memref<2x8xf32, #tpu.memory_space<vmem>>, vector<2x8xf32>
    tpu.vector_store %arg5[%c0_11, %c0_12], %24 {strides = array<i32>} : memref<2x8xf32, #tpu.memory_space<vmem>>, vector<2x8xf32>,
    return
  }
  func.func @transform_0(%arg0: i32) -> (i32, i32) {
    %c0_i32 = arith.constant 0 : i32
    %c0_i32_0 = arith.constant 0 : i32
    return %arg0, %c0_i32 : i32, i32
  }
  func.func @transform_1(%arg0: i32) -> (i32, i32, i32) {
    %c0_i32 = arith.constant 0 : i32
    %c0_i32_0 = arith.constant 0 : i32
    %c0_i32_1 = arith.constant 0 : i32
    return %arg0, %c0_i32, %c0_i32_0 : i32, i32, i32
  }
  func.func @transform_2(%arg0: i32) -> (i32, i32) {
    %c0_i32 = arith.constant 0 : i32
    %c0_i32_0 = arith.constant 0 : i32
    %c0_i32_1 = arith.constant 0 : i32
    return %c0_i32, %c0_i32_0 : i32, i32
  }
  func.func @transform_3(%arg0: i32) -> (i32, i32) {
    %c0_i32 = arith.constant 0 : i32
    %c0_i32_0 = arith.constant 0 : i32
    %c0_i32_1 = arith.constant 0 : i32
    return %c0_i32, %c0_i32_0 : i32, i32
  }
  func.func @transform_4(%arg0: i32) -> (i32, i32) {
    %c0_i32 = arith.constant 0 : i32
    %c0_i32_0 = arith.constant 0 : i32
    return %arg0, %c0_i32 : i32, i32
  }
}

module attributes {stable_mosaic.version = 11 : i64} {
  func.func @_attention_kernel(%arg0: i32, %arg1: memref<2x32xf32, #tpu.memory_space<vmem>>, %arg2: memref<2x8x32xf32, #tpu.memory_space<vmem>>, %arg3: memref<32x32xf32, #tpu.memory_space<vmem>>, %arg4: memref<1x32xf32, #tpu.memory_space<vmem>>, %arg5: memref<2x8xf32, #tpu.memory_space<vmem>>) attributes {dimension_semantics = [#tpu.dimension_semantics<parallel>], iteration_bounds = array<i64: 1>, scalar_prefetch = 0 : i64, scratch_operands = 0 : i64, tpu.core_type = #tpu.core_type<tc>, window_params = [{transform_indices = @transform_0, window_bounds = array<i64: 2, 32>}, {transform_indices = @transform_1, window_bounds = array<i64: 2, 8, 32>}, {pipeline_mode = #tpu.pipeline_mode<synchronous>, transform_indices = @transform_2, window_bounds = array<i64: 32, 32>}, {pipeline_mode = #tpu.pipeline_mode<synchronous>, transform_indices = @transform_3, window_bounds = array<i64: 1, 32>}, {transform_indices = @transform_4, window_bounds = array<i64: 2, 8>}]} {
    %c0 = arith.constant 0 : index
    %c0_0 = arith.constant 0 : index
    %c0_1 = arith.constant 0 : index
    %0 = vector.load %arg2[%c0, %c0_0, %c0_1] : memref<2x8x32xf32, #tpu.memory_space<vmem>>, vector<2x8x32xf32>
    %1 = vector.shape_cast %0 : vector<2x8x32xf32> to vector<16x32xf32>
    %c0_2 = arith.constant 0 : index
    %c0_3 = arith.constant 0 : index
    %2 = vector.load %arg3[%c0_2, %c0_3] : memref<32x32xf32, #tpu.memory_space<vmem>>, vector<32x32xf32>
    %cst = arith.constant dense<0.000000e+00> : vector<16x32xf32>
    %3 = tpu.matmul %1, %2, %cst {dimension_numbers = #tpu.dot_dimension_numbers<[1], [0], [0], [1], [0, 0, 1, 1], [], []>} : vector<16x32xf32>, vector<32x32xf32>, vector<16x32xf32> -> vector<16x32xf32>
    %4 = vector.shape_cast %3 : vector<16x32xf32> to vector<2x8x32xf32>
    %c0_4 = arith.constant 0 : index
    %c0_5 = arith.constant 0 : index
    %5 = vector.load %arg1[%c0_4, %c0_5] : memref<2x32xf32, #tpu.memory_space<vmem>>, vector<2x32xf32>
    %6 = vector.shape_cast %5 : vector<2x32xf32> to vector<2x1x32xf32>
    %7 = vector.broadcast %6 : vector<2x1x32xf32> to vector<2x8x32xf32>
    %8 = arith.addf %4, %7 : vector<2x8x32xf32>
    %9 = math.tanh %8 : vector<2x8x32xf32>
    %c0_6 = arith.constant 0 : index
    %c0_7 = arith.constant 0 : index
    %10 = vector.load %arg4[%c0_6, %c0_7] : memref<1x32xf32, #tpu.memory_space<vmem>>, vector<1x32xf32>
    %11 = vector.shape_cast %10 : vector<1x32xf32> to vector<1x1x32xf32>
    %12 = vector.broadcast %11 : vector<1x1x32xf32> to vector<2x8x32xf32>
    %13 = arith.mulf %9, %12 : vector<2x8x32xf32>
    %cst_8 = arith.constant dense<0.000000e+00> : vector<2x8xf32>
    %14 = vector.multi_reduction <add>, %13, %cst_8 [2] : vector<2x8x32xf32> to vector<2x8xf32>
    %cst_9 = arith.constant dense<0xFF800000> : vector<2xf32>
    %15 = vector.multi_reduction <maximumf>, %14, %cst_9 [1] : vector<2x8xf32> to vector<2xf32>
    %16 = vector.shape_cast %15 : vector<2xf32> to vector<2x1xf32>
    %17 = vector.broadcast %16 : vector<2x1xf32> to vector<2x8xf32>
    %18 = arith.subf %14, %17 : vector<2x8xf32>
    %19 = math.exp %18 : vector<2x8xf32>
    %cst_10 = arith.constant dense<0.000000e+00> : vector<2xf32>
    %20 = vector.multi_reduction <add>, %19, %cst_10 [1] : vector<2x8xf32> to vector<2xf32>
    %21 = vector.shape_cast %20 : vector<2xf32> to vector<2x1xf32>
    %22 = tpu.reciprocal %21 : vector<2x1xf32> -> vector<2x1xf32>
    %23 = vector.broadcast %22 : vector<2x1xf32> to vector<2x8xf32>
    %24 = arith.mulf %19, %23 : vector<2x8xf32>
    %c0_11 = arith.constant 0 : index
    %c0_12 = arith.constant 0 : index
    %25 = vector.load %arg5[%c0_11, %c0_12] : memref<2x8xf32, #tpu.memory_space<vmem>>, vector<2x8xf32>
    tpu.vector_store %arg5[%c0_11, %c0_12], %24 {strides = array<i32>} : memref<2x8xf32, #tpu.memory_space<vmem>>, vector<2x8xf32>,
    return
  }
  func.func @transform_0(%arg0: i32) -> (i32, i32) {
    %c0_i32 = arith.constant 0 : i32
    %c0_i32_0 = arith.constant 0 : i32
    return %arg0, %c0_i32 : i32, i32
  }
  func.func @transform_1(%arg0: i32) -> (i32, i32, i32) {
    %c0_i32 = arith.constant 0 : i32
    %c0_i32_0 = arith.constant 0 : i32
    %c0_i32_1 = arith.constant 0 : i32
    return %arg0, %c0_i32, %c0_i32_0 : i32, i32, i32
  }
  func.func @transform_2(%arg0: i32) -> (i32, i32) {
    %c0_i32 = arith.constant 0 : i32
    %c0_i32_0 = arith.constant 0 : i32
    %c0_i32_1 = arith.constant 0 : i32
    return %c0_i32, %c0_i32_0 : i32, i32
  }
  func.func @transform_3(%arg0: i32) -> (i32, i32) {
    %c0_i32 = arith.constant 0 : i32
    %c0_i32_0 = arith.constant 0 : i32
    %c0_i32_1 = arith.constant 0 : i32
    return %c0_i32, %c0_i32_0 : i32, i32
  }
  func.func @transform_4(%arg0: i32) -> (i32, i32) {
    %c0_i32 = arith.constant 0 : i32
    %c0_i32_0 = arith.constant 0 : i32
    return %arg0, %c0_i32 : i32, i32
  }
}

</mosaic_0001>

<bundles_post_ra>
// kernel: tpu_custom_call.1
= control target key start
LH: loop header
LB: loop body
LE: loop exit
PB: predicated region body
PF: predicated region fallthrough
CT: control target
= control target key end

     0   :  { %9 = vsyncpa [#allocation3], 0  ;;  %s553_s0 = inlined_call_operand.hbm [shape: f32[2,32], index: 0, kind: input, shape index: {}]   ;;  %s554_s1 = inlined_call_operand.hbm [shape: f32[2,8,32], index: 1, kind: input, shape index: {}]   ;;  %s555_s2 = inlined_call_operand.hbm [shape: f32[32,32], index: 2, kind: input, shape index: {}]   ;;  %s556_s3 = inlined_call_operand.vmem [shape: f32[1,32], index: 3, kind: input, shape index: {}]   ;;  %s557_s4 = inlined_call_operand.hbm [shape: f32[2,8], index: 4, kind: output, shape index: {}]  }
   0x1   :  { %10 = vsyncpa [#allocation6], 0 }
   0x2   :  { %11 = vsyncpa [#allocation4], 0  ;;  %s447_s15 = smov [#allocation5]   ;;  %s353_s19 = scalar_lea.hbm %s554_s1, 256 }
   0x3   :  { %s27_s16 = sshll.u32 %s447_s15, 4  ;;  %p354_p0 = scmp.ne.s32.totalorder %s554_s1, %s353_s19  ;;  %s28_s16 = int_to_ptr.vmem [resolvable:$true] %s27_s16 }
   0x4   :  { %p357_p1 = scmp.lt.u32.totalorder %s353_s19, %s554_s1 }
   0x6   :  { %p359_p2 = pnand %p357_p1, %p354_p0 }
   0x8   :  { %362 = shalt.err (!%p359_p2)
}
   0x9   :  { %s363_s24 = scalar_lea.vmem %s28_s16, 256  ;;  %p368_p4 = scmp.lt.s32.totalorder %s28_s16, %s28_s16 }
   0xa   :  { %p364_p3 = scmp.ne.s32.totalorder %s28_s16, %s363_s24  ;;  %p369_p5 = scmp.lt.s32.totalorder %s363_s24, %s363_s24 }
   0xc   :  { %p370_p6 = por %p369_p5, %p368_p4 }
   0xe   :  { %p371_p7 = pnand %p370_p6, %p364_p3 }
  0x10   :  { %374 = shalt.err (!%p371_p7)
}
  0x11   :  { %s448_s25 = smov 128   ;;  %s449_s26 = smov 8  }
  0x12   :  { %33 = dma.hbm_to_vmem [thread:$0]  %s554_s1, 256, %s28_s16, [#allocation6], %s448_s25, %s448_s25, %s449_s26  }
  0x13   :  { %s450_s29 = smov [#allocation2]   ;;  %s451_s5 = smov [#allocation7]  }
  0x14   :  { %s18_s30 = sshll.u32 %s450_s29, 4  ;;  %s39_s6 = sshll.u32 %s451_s5, 4  ;;  %s19_s30 = int_to_ptr.vmem [resolvable:$true] %s18_s30  ;;  %s40_s6 = int_to_ptr.vmem [resolvable:$true] %s39_s6 }
  0x15   :  { %s375_s9 = scalar_lea.hbm %s553_s0, 32 }
  0x16   :  { %p376_p8 = scmp.ne.s32.totalorder %s553_s0, %s375_s9  ;;  %p379_p9 = scmp.lt.u32.totalorder %s375_s9, %s553_s0 }
  0x18   :  { %p381_p10 = pnand %p379_p9, %p376_p8 }
  0x1a   :  { %384 = shalt.err (!%p381_p10)
}
  0x1b   :  { %s385_s1 = scalar_lea.vmem %s19_s30, 32  ;;  %p390_p12 = scmp.lt.s32.totalorder %s19_s30, %s19_s30 }
  0x1c   :  { %p386_p11 = scmp.ne.s32.totalorder %s19_s30, %s385_s1  ;;  %p391_p13 = scmp.lt.s32.totalorder %s385_s1, %s385_s1 }
  0x1e   :  { %p392_p0 = por %p391_p13, %p390_p12 }
  0x20   :  { %p393_p1 = pnand %p392_p0, %p386_p11 }
  0x22   :  { %396 = shalt.err (!%p393_p1)
}
  0x23   :  { %21 = dma.hbm_to_vmem [thread:$0]  %s553_s0, 32, %s19_s30, [#allocation3]  }
  0x24   :  { %s397_s18 = scalar_lea.hbm %s555_s2, 512 }
  0x25   :  { %p398_p2 = scmp.ne.s32.totalorder %s555_s2, %s397_s18  ;;  %p401_p3 = scmp.lt.u32.totalorder %s397_s18, %s555_s2 }
  0x27   :  { %p403_p4 = pnand %p401_p3, %p398_p2 }
  0x29   :  { %406 = shalt.err (!%p403_p4)
}
  0x2a   :  { %s407_s23 = scalar_lea.vmem %s40_s6, 512  ;;  %p412_p6 = scmp.lt.s32.totalorder %s40_s6, %s40_s6 }
  0x2b   :  { %p408_p5 = scmp.ne.s32.totalorder %s40_s6, %s407_s23  ;;  %p413_p7 = scmp.lt.s32.totalorder %s407_s23, %s407_s23 }
  0x2d   :  { %p414_p8 = por %p413_p7, %p412_p6 }
  0x2f   :  { %p415_p9 = pnand %p414_p8, %p408_p5 }
  0x31   :  { %418 = shalt.err (!%p415_p9)
}
  0x32   :  { %45 = dma.hbm_to_vmem [thread:$0]  %s555_s2, 512, %s40_s6, [#allocation6], %s448_s25, %s448_s25, %s449_s26  }
  0x33   :  { %441 = dma.done.wait [#allocation3], 32  }
  0x34   :  { %442 = vsyncadd [#allocation3], 4294967264 }
  0x35   :  { %443 = dma.done.wait [#allocation6], 768  }
  0x36   :  { %444 = vsyncadd [#allocation6], 4294966528  ;;  %vm63_vm0 = vcmask 261120   ;;  %v59_v0 = vld [vmem:[#allocation7] sm:$0xff]  ;;  %v60_v1 = vld [vmem:[#allocation7 + $0x8] sm:$0xff]  ;;  %v158_v10 = vlaneseq  ;;  %vm210_vm1 = vcmask 1041409  }
  0x37   :  { %v61_v2 = vld [vmem:[#allocation7 + $0x10] sm:$0xff]  ;;  %v325_v3 = vpack.c.bf16 %v60_v1, %v59_v0  ;;  %v62_v4 = vld [vmem:[#allocation7 + $0x18] sm:$0xff]  ;;  %v452_v8 = vmov 1966171168   ;;  %v307_v25 = vld [vmem:[%s556_s3] ss:$0 sm:$0xff] }
  0x38   :  { %v57_v5 = vld [vmem:[#allocation5] sm:$0xff]  ;;  %v329_v6 = vpack.c.bf16 %v62_v4, %v61_v2  ;;  %v58_v7 = vld [vmem:[#allocation5 + $0x8] sm:$0xff]  ;;  %v156_v9 = vunpack.c.l.s4 %v452_v8  ;;  %v524_v12 = vshrl.u32 %v158_v10, 7  ;;  %v201_v32 = vand.u32 127, %v158_v10  ;;  %s454_s3 = smov [#allocation8]  }
  0x39   :  { %322 = vmatprep.mubr.msk.f32.mxu0 %vm63_vm0, %v57_v5  ;;  %326 = vmatprep.subr.bf16.mxu0 %v325_v3  ;;  %v306_v13 = vld.sshfl [vmem:[#allocation2] sm:$0x11 pattern:$0x75316420]  ;;  %vm213_vm2 = vcmask 58368   ;;  %v453_v40 = vmov 0  }
  0x3a   :  { %328 = vmatpush3.bf16.msra.mxu0 %v325_v3  ;;  %v157_v11 = vunpack.c.0.s8 %v156_v9  ;;  %v154_v14 = vcombine.high %v306_v13, %v306_v13  ;;  %v171_v17 = vsub.s32 0, %v524_v12  ;;  %v204_v34 = vsub.s32 %v201_v32, %v524_v12  ;;  %342 = vset.pattern.permute.xlu0 %v453_v40  ;;  %s294_s26 = sshll.u32 %s454_s3, 4  ;;  %s295_s26 = int_to_ptr.vmem [resolvable:$true] %s294_s26 }
  0x3b   :  { %330 = vmatprep.subr.bf16.mxu0 %v329_v6  ;;  %341 = vset.pattern.permute.xlu1 %v453_v40  ;;  %v224_v41 = vsub.s32 1, %v524_v12  ;;  %s419_s27 = scalar_lea.vmem %s295_s26, 32  ;;  %p424_p11 = scmp.lt.s32.totalorder %s295_s26, %s295_s26 }
  0x3c   :  { %v160_v15 = vsub.s32 %v157_v11, %v524_v12  ;;  %p420_p10 = scmp.ne.s32.totalorder %s295_s26, %s419_s27  ;;  %p425_p12 = scmp.lt.s32.totalorder %s419_s27, %s419_s27 }
  0x3e   :  { %332 = vmatpush3.bf16.msra.mxu0 %v329_v6  ;;  %v168_v16 = vrot.slane %v154_v14, %v160_v15  ;;  %v161_v18 = vrot.slane %v306_v13, %v160_v15  ;;  %p426_p13 = por %p425_p12, %p424_p11 }
  0x40   :  { %v176_v19 = vrot.slane %v168_v16, %v171_v17  ;;  %v172_v20 = vrot.slane %v161_v18, %v171_v17  ;;  %p427_p0 = pnand %p426_p13, %p420_p10 }
  0x41   :  { %323 = vmatmul.mubr.msk.f32.vlgmr.msra.gmra.mrb[0].mxu0 %vm63_vm0, %v58_v7 }
 0x114   :  { %v324_v21 = vpop.f32.mrb[0].mxu0 }
 0x115   :  { %v180_v22 = vadd.f32 %v324_v21, %v176_v19  ;;  %v136_v23 = vpop.f32.mrb[1].mxu0 }
 0x116   :  { %v179_v24 = vadd.f32 %v172_v20, %v136_v23 }
 0x117   :  { %343 = vtanh.f32 %v180_v22 }
 0x118   :  { %345 = vtanh.f32 %v179_v24 }
 0x121   :  { %v344_v26 = vpop.eup %343 }
 0x122   :  { %v346_v27 = vpop.eup %345  ;;  %v191_v30 = vmul.f32 %v344_v26, %v307_v25 }
 0x123   :  { %v190_v28 = vmul.f32 %v346_v27, %v307_v25 }
 0x124   :  { %v195_v31 = vsel %vm63_vm0, %v191_v30, 0.0 }
 0x125   :  { %v192_v29 = vsel %vm63_vm0, %v190_v28, 0.0 }
 0x126   :  { %193 = vadd.xlane.f32.xlu0 %v192_v29 }
 0x12a   :  { %196 = vadd.xlane.f32.xlu0 %v195_v31 }
 0x1b3   :  { %v194_v33 = vpop.xlane.xlu0 %193 }
 0x1b4   :  { %v205_v36 = vrot.slane %v194_v33, %v204_v34 }
 0x1b7   :  { %v197_v35 = vpop.xlane.xlu0 %196 }
 0x1b8   :  { %v209_v37 = vrot.slane %v197_v35, %v204_v34 }
 0x1ba   :  { %v211_v38 = vsel %vm210_vm1, %v209_v37, %v205_v36 }
 0x1bb   :  { %v214_v39 = vsel %vm213_vm2, %v211_v38, -inf }
 0x1bc   :  { %215 = vmax.xlane.f32.xlu1 %v214_v39 }
 0x249   :  { %v216_v42 = vpop.xlane.xlu1 %215 }
 0x24a   :  { %v221_v43 = vrot.slane %v216_v42, %v171_v17  ;;  %v225_v44 = vrot.slane %v216_v42, %v224_v41 }
 0x24c   :  { %v228_v45 = vsub.f32 %v194_v33, %v221_v43  ;;  %v229_v46 = vsub.f32 %v197_v35, %v225_v44 }
 0x24e   :  { %v230_v47 = vmul.f32 1.442695, %v228_v45  ;;  %v232_v48 = vmul.f32 1.442695, %v229_v46 }
 0x250   :  { %347 = vpow2.f32 %v230_v47 }
 0x251   :  { %349 = vpow2.f32 %v232_v48 }
 0x25a   :  { %v348_v49 = vpop.eup %347 }
 0x25b   :  { %v350_v50 = vpop.eup %349  ;;  %237 = vperm.xlu1 %341, %v348_v49  }
 0x25c   :  { %240 = vperm.xlu0 %342, %v350_v50  }
 0x2da   :  { %v238_v51 = vpop.permute.xlu1 %237 }
 0x2db   :  { %v241_v52 = vpop.permute.xlu0 %240  ;;  %v245_v53 = vrot.slane %v238_v51, %v204_v34 }
 0x2dc   :  { %v249_v54 = vrot.slane %v241_v52, %v204_v34 }
 0x2de   :  { %v250_v55 = vsel %vm210_vm1, %v249_v54, %v245_v53 }
 0x2df   :  { %v252_v56 = vsel %vm213_vm2, %v250_v55, 0.0 }
 0x2e0   :  { %253 = vadd.xlane.f32.xlu1 %v252_v56 }
 0x36d   :  { %v254_v57 = vpop.xlane.xlu1 %253 }
 0x36e   :  { %351 = vrcp.f32 %v254_v57 }
 0x378   :  { %v352_v58 = vpop.eup %351 }
 0x379   :  { %v260_v59 = vrot.slane %v352_v58, %v171_v17  ;;  %v264_v61 = vrot.slane %v352_v58, %v224_v41 }
 0x37b   :  { %v267_v60 = vmul.f32 %v348_v49, %v260_v59  ;;  %v268_v62 = vmul.f32 %v350_v50, %v264_v61 }
 0x37d   :  { %272 = vperm.xlu0 %342, %v267_v60  }
 0x381   :  { %275 = vperm.xlu0 %342, %v268_v62  }
 0x3fc   :  { %v273_v63 = vpop.permute.xlu0 %272 }
 0x3fd   :  { %v280_v1 = vrot.slane %v273_v63, %v204_v34 }
 0x400   :  { %v276_v0 = vpop.permute.xlu0 %275 }
 0x401   :  { %v284_v2 = vrot.slane %v276_v0, %v204_v34 }
 0x403   :  { %v285_v3 = vsel %vm210_vm1, %v284_v2, %v280_v1 }
 0x404   :  { %287 = vst.msk [vmem:[#allocation8] sm:$0x3] %vm213_vm2, %v285_v3 }
 0x405   :  { %430 = shalt.err (!%p427_p0)
}
 0x406   :  { %s431_s30 = scalar_lea.hbm %s557_s4, 32 }
 0x407   :  { %p432_p1 = scmp.ne.s32.totalorder %s557_s4, %s431_s30  ;;  %p435_p2 = scmp.lt.u32.totalorder %s431_s30, %s557_s4 }
 0x409   :  { %p437_p3 = pnand %p435_p2, %p432_p1 }
 0x40b   :  { %440 = shalt.err (!%p437_p3)
}
 0x40c   :  { %297 = dma.vmem_to_hbm [thread:$0]  %s295_s26, 32, %s557_s4, [#allocation4]  }
 0x40d   :  { %445 = dma.done.wait [#allocation4], 32  }
 0x40e   :  { %446 = vsyncadd [#allocation4], 4294967264 }
 0x40f   :  { %301 = vsyncpa [#allocation3], 1 }
 0x410   :  { %302 = vsyncpa [#allocation6], 1 }
 0x411   :  { %303 = vsyncpa [#allocation4], 1 }

// kernel: tpu_custom_call.1
= control target key start
LH: loop header
LB: loop body
LE: loop exit
PB: predicated region body
PF: predicated region fallthrough
CT: control target
= control target key end

     0   :  { %9 = vsyncpa [#allocation3], 0  ;;  %s553_s0 = inlined_call_operand.hbm [shape: f32[2,32], index: 0, kind: input, shape index: {}]   ;;  %s554_s1 = inlined_call_operand.hbm [shape: f32[2,8,32], index: 1, kind: input, shape index: {}]   ;;  %s555_s2 = inlined_call_operand.hbm [shape: f32[32,32], index: 2, kind: input, shape index: {}]   ;;  %s556_s3 = inlined_call_operand.vmem [shape: f32[1,32], index: 3, kind: input, shape index: {}]   ;;  %s557_s4 = inlined_call_operand.hbm [shape: f32[2,8], index: 4, kind: output, shape index: {}]  }
   0x1   :  { %10 = vsyncpa [#allocation6], 0 }
   0x2   :  { %11 = vsyncpa [#allocation4], 0  ;;  %s447_s15 = smov [#allocation5]   ;;  %s353_s19 = scalar_lea.hbm %s554_s1, 256 }
   0x3   :  { %s27_s16 = sshll.u32 %s447_s15, 4  ;;  %p354_p0 = scmp.ne.s32.totalorder %s554_s1, %s353_s19  ;;  %s28_s16 = int_to_ptr.vmem [resolvable:$true] %s27_s16 }
   0x4   :  { %p357_p1 = scmp.lt.u32.totalorder %s353_s19, %s554_s1 }
   0x6   :  { %p359_p2 = pnand %p357_p1, %p354_p0 }
   0x8   :  { %362 = shalt.err (!%p359_p2)
}
   0x9   :  { %s363_s24 = scalar_lea.vmem %s28_s16, 256  ;;  %p368_p4 = scmp.lt.s32.totalorder %s28_s16, %s28_s16 }
   0xa   :  { %p364_p3 = scmp.ne.s32.totalorder %s28_s16, %s363_s24  ;;  %p369_p5 = scmp.lt.s32.totalorder %s363_s24, %s363_s24 }
   0xc   :  { %p370_p6 = por %p369_p5, %p368_p4 }
   0xe   :  { %p371_p7 = pnand %p370_p6, %p364_p3 }
  0x10   :  { %374 = shalt.err (!%p371_p7)
}
  0x11   :  { %s448_s25 = smov 128   ;;  %s449_s26 = smov 8  }
  0x12   :  { %33 = dma.hbm_to_vmem [thread:$0]  %s554_s1, 256, %s28_s16, [#allocation6], %s448_s25, %s448_s25, %s449_s26  }
  0x13   :  { %s450_s29 = smov [#allocation2]   ;;  %s451_s5 = smov [#allocation7]  }
  0x14   :  { %s18_s30 = sshll.u32 %s450_s29, 4  ;;  %s39_s6 = sshll.u32 %s451_s5, 4  ;;  %s19_s30 = int_to_ptr.vmem [resolvable:$true] %s18_s30  ;;  %s40_s6 = int_to_ptr.vmem [resolvable:$true] %s39_s6 }
  0x15   :  { %s375_s9 = scalar_lea.hbm %s553_s0, 32 }
  0x16   :  { %p376_p8 = scmp.ne.s32.totalorder %s553_s0, %s375_s9  ;;  %p379_p9 = scmp.lt.u32.totalorder %s375_s9, %s553_s0 }
  0x18   :  { %p381_p10 = pnand %p379_p9, %p376_p8 }
  0x1a   :  { %384 = shalt.err (!%p381_p10)
}
  0x1b   :  { %s385_s1 = scalar_lea.vmem %s19_s30, 32  ;;  %p390_p12 = scmp.lt.s32.totalorder %s19_s30, %s19_s30 }
  0x1c   :  { %p386_p11 = scmp.ne.s32.totalorder %s19_s30, %s385_s1  ;;  %p391_p13 = scmp.lt.s32.totalorder %s385_s1, %s385_s1 }
  0x1e   :  { %p392_p0 = por %p391_p13, %p390_p12 }
  0x20   :  { %p393_p1 = pnand %p392_p0, %p386_p11 }
  0x22   :  { %396 = shalt.err (!%p393_p1)
}
  0x23   :  { %21 = dma.hbm_to_vmem [thread:$0]  %s553_s0, 32, %s19_s30, [#allocation3]  }
  0x24   :  { %s397_s18 = scalar_lea.hbm %s555_s2, 512 }
  0x25   :  { %p398_p2 = scmp.ne.s32.totalorder %s555_s2, %s397_s18  ;;  %p401_p3 = scmp.lt.u32.totalorder %s397_s18, %s555_s2 }
  0x27   :  { %p403_p4 = pnand %p401_p3, %p398_p2 }
  0x29   :  { %406 = shalt.err (!%p403_p4)
}
  0x2a   :  { %s407_s23 = scalar_lea.vmem %s40_s6, 512  ;;  %p412_p6 = scmp.lt.s32.totalorder %s40_s6, %s40_s6 }
  0x2b   :  { %p408_p5 = scmp.ne.s32.totalorder %s40_s6, %s407_s23  ;;  %p413_p7 = scmp.lt.s32.totalorder %s407_s23, %s407_s23 }
  0x2d   :  { %p414_p8 = por %p413_p7, %p412_p6 }
  0x2f   :  { %p415_p9 = pnand %p414_p8, %p408_p5 }
  0x31   :  { %418 = shalt.err (!%p415_p9)
}
  0x32   :  { %45 = dma.hbm_to_vmem [thread:$0]  %s555_s2, 512, %s40_s6, [#allocation6], %s448_s25, %s448_s25, %s449_s26  }
  0x33   :  { %441 = dma.done.wait [#allocation3], 32  }
  0x34   :  { %442 = vsyncadd [#allocation3], 4294967264 }
  0x35   :  { %443 = dma.done.wait [#allocation6], 768  }
  0x36   :  { %444 = vsyncadd [#allocation6], 4294966528  ;;  %vm63_vm0 = vcmask 261120   ;;  %v59_v0 = vld [vmem:[#allocation7] sm:$0xff]  ;;  %v60_v1 = vld [vmem:[#allocation7 + $0x8] sm:$0xff]  ;;  %v158_v10 = vlaneseq  ;;  %vm210_vm1 = vcmask 1041409  }
  0x37   :  { %v61_v2 = vld [vmem:[#allocation7 + $0x10] sm:$0xff]  ;;  %v325_v3 = vpack.c.bf16 %v60_v1, %v59_v0  ;;  %v62_v4 = vld [vmem:[#allocation7 + $0x18] sm:$0xff]  ;;  %v452_v8 = vmov 1966171168   ;;  %v307_v25 = vld [vmem:[%s556_s3] ss:$0 sm:$0xff] }
  0x38   :  { %v57_v5 = vld [vmem:[#allocation5] sm:$0xff]  ;;  %v329_v6 = vpack.c.bf16 %v62_v4, %v61_v2  ;;  %v58_v7 = vld [vmem:[#allocation5 + $0x8] sm:$0xff]  ;;  %v156_v9 = vunpack.c.l.s4 %v452_v8  ;;  %v524_v12 = vshrl.u32 %v158_v10, 7  ;;  %v201_v32 = vand.u32 127, %v158_v10  ;;  %s454_s3 = smov [#allocation8]  }
  0x39   :  { %322 = vmatprep.mubr.msk.f32.mxu0 %vm63_vm0, %v57_v5  ;;  %326 = vmatprep.subr.bf16.mxu0 %v325_v3  ;;  %v306_v13 = vld.sshfl [vmem:[#allocation2] sm:$0x11 pattern:$0x75316420]  ;;  %vm213_vm2 = vcmask 58368   ;;  %v453_v40 = vmov 0  }
  0x3a   :  { %328 = vmatpush3.bf16.msra.mxu0 %v325_v3  ;;  %v157_v11 = vunpack.c.0.s8 %v156_v9  ;;  %v154_v14 = vcombine.high %v306_v13, %v306_v13  ;;  %v171_v17 = vsub.s32 0, %v524_v12  ;;  %v204_v34 = vsub.s32 %v201_v32, %v524_v12  ;;  %342 = vset.pattern.permute.xlu0 %v453_v40  ;;  %s294_s26 = sshll.u32 %s454_s3, 4  ;;  %s295_s26 = int_to_ptr.vmem [resolvable:$true] %s294_s26 }
  0x3b   :  { %330 = vmatprep.subr.bf16.mxu0 %v329_v6  ;;  %341 = vset.pattern.permute.xlu1 %v453_v40  ;;  %v224_v41 = vsub.s32 1, %v524_v12  ;;  %s419_s27 = scalar_lea.vmem %s295_s26, 32  ;;  %p424_p11 = scmp.lt.s32.totalorder %s295_s26, %s295_s26 }
  0x3c   :  { %v160_v15 = vsub.s32 %v157_v11, %v524_v12  ;;  %p420_p10 = scmp.ne.s32.totalorder %s295_s26, %s419_s27  ;;  %p425_p12 = scmp.lt.s32.totalorder %s419_s27, %s419_s27 }
  0x3e   :  { %332 = vmatpush3.bf16.msra.mxu0 %v329_v6  ;;  %v168_v16 = vrot.slane %v154_v14, %v160_v15  ;;  %v161_v18 = vrot.slane %v306_v13, %v160_v15  ;;  %p426_p13 = por %p425_p12, %p424_p11 }
  0x40   :  { %v176_v19 = vrot.slane %v168_v16, %v171_v17  ;;  %v172_v20 = vrot.slane %v161_v18, %v171_v17  ;;  %p427_p0 = pnand %p426_p13, %p420_p10 }
  0x41   :  { %323 = vmatmul.mubr.msk.f32.vlgmr.msra.gmra.mrb[0].mxu0 %vm63_vm0, %v58_v7 }
 0x114   :  { %v324_v21 = vpop.f32.mrb[0].mxu0 }
 0x115   :  { %v180_v22 = vadd.f32 %v324_v21, %v176_v19  ;;  %v136_v23 = vpop.f32.mrb[1].mxu0 }
 0x116   :  { %v179_v24 = vadd.f32 %v172_v20, %v136_v23 }
 0x117   :  { %343 = vtanh.f32 %v180_v22 }
 0x118   :  { %345 = vtanh.f32 %v179_v24 }
 0x121   :  { %v344_v26 = vpop.eup %343 }
 0x122   :  { %v346_v27 = vpop.eup %345  ;;  %v191_v30 = vmul.f32 %v344_v26, %v307_v25 }
 0x123   :  { %v190_v28 = vmul.f32 %v346_v27, %v307_v25 }
 0x124   :  { %v195_v31 = vsel %vm63_vm0, %v191_v30, 0.0 }
 0x125   :  { %v192_v29 = vsel %vm63_vm0, %v190_v28, 0.0 }
 0x126   :  { %193 = vadd.xlane.f32.xlu0 %v192_v29 }
 0x12a   :  { %196 = vadd.xlane.f32.xlu0 %v195_v31 }
 0x1b3   :  { %v194_v33 = vpop.xlane.xlu0 %193 }
 0x1b4   :  { %v205_v36 = vrot.slane %v194_v33, %v204_v34 }
 0x1b7   :  { %v197_v35 = vpop.xlane.xlu0 %196 }
 0x1b8   :  { %v209_v37 = vrot.slane %v197_v35, %v204_v34 }
 0x1ba   :  { %v211_v38 = vsel %vm210_vm1, %v209_v37, %v205_v36 }
 0x1bb   :  { %v214_v39 = vsel %vm213_vm2, %v211_v38, -inf }
 0x1bc   :  { %215 = vmax.xlane.f32.xlu1 %v214_v39 }
 0x249   :  { %v216_v42 = vpop.xlane.xlu1 %215 }
 0x24a   :  { %v221_v43 = vrot.slane %v216_v42, %v171_v17  ;;  %v225_v44 = vrot.slane %v216_v42, %v224_v41 }
 0x24c   :  { %v228_v45 = vsub.f32 %v194_v33, %v221_v43  ;;  %v229_v46 = vsub.f32 %v197_v35, %v225_v44 }
 0x24e   :  { %v230_v47 = vmul.f32 1.442695, %v228_v45  ;;  %v232_v48 = vmul.f32 1.442695, %v229_v46 }
 0x250   :  { %347 = vpow2.f32 %v230_v47 }
 0x251   :  { %349 = vpow2.f32 %v232_v48 }
 0x25a   :  { %v348_v49 = vpop.eup %347 }
 0x25b   :  { %v350_v50 = vpop.eup %349  ;;  %237 = vperm.xlu1 %341, %v348_v49  }
 0x25c   :  { %240 = vperm.xlu0 %342, %v350_v50  }
 0x2da   :  { %v238_v51 = vpop.permute.xlu1 %237 }
 0x2db   :  { %v241_v52 = vpop.permute.xlu0 %240  ;;  %v245_v53 = vrot.slane %v238_v51, %v204_v34 }
 0x2dc   :  { %v249_v54 = vrot.slane %v241_v52, %v204_v34 }
 0x2de   :  { %v250_v55 = vsel %vm210_vm1, %v249_v54, %v245_v53 }
 0x2df   :  { %v252_v56 = vsel %vm213_vm2, %v250_v55, 0.0 }
 0x2e0   :  { %253 = vadd.xlane.f32.xlu1 %v252_v56 }
 0x36d   :  { %v254_v57 = vpop.xlane.xlu1 %253 }
 0x36e   :  { %351 = vrcp.f32 %v254_v57 }
 0x378   :  { %v352_v58 = vpop.eup %351 }
 0x379   :  { %v260_v59 = vrot.slane %v352_v58, %v171_v17  ;;  %v264_v61 = vrot.slane %v352_v58, %v224_v41 }
 0x37b   :  { %v267_v60 = vmul.f32 %v348_v49, %v260_v59  ;;  %v268_v62 = vmul.f32 %v350_v50, %v264_v61 }
 0x37d   :  { %272 = vperm.xlu0 %342, %v267_v60  }
 0x381   :  { %275 = vperm.xlu0 %342, %v268_v62  }
 0x3fc   :  { %v273_v63 = vpop.permute.xlu0 %272 }
 0x3fd   :  { %v280_v1 = vrot.slane %v273_v63, %v204_v34 }
 0x400   :  { %v276_v0 = vpop.permute.xlu0 %275 }
 0x401   :  { %v284_v2 = vrot.slane %v276_v0, %v204_v34 }
 0x403   :  { %v285_v3 = vsel %vm210_vm1, %v284_v2, %v280_v1 }
 0x404   :  { %287 = vst.msk [vmem:[#allocation8] sm:$0x3] %vm213_vm2, %v285_v3 }
 0x405   :  { %430 = shalt.err (!%p427_p0)
}
 0x406   :  { %s431_s30 = scalar_lea.hbm %s557_s4, 32 }
 0x407   :  { %p432_p1 = scmp.ne.s32.totalorder %s557_s4, %s431_s30  ;;  %p435_p2 = scmp.lt.u32.totalorder %s431_s30, %s557_s4 }
 0x409   :  { %p437_p3 = pnand %p435_p2, %p432_p1 }
 0x40b   :  { %440 = shalt.err (!%p437_p3)
}
 0x40c   :  { %297 = dma.vmem_to_hbm [thread:$0]  %s295_s26, 32, %s557_s4, [#allocation4]  }
 0x40d   :  { %445 = dma.done.wait [#allocation4], 32  }
 0x40e   :  { %446 = vsyncadd [#allocation4], 4294967264 }
 0x40f   :  { %301 = vsyncpa [#allocation3], 1 }
 0x410   :  { %302 = vsyncpa [#allocation6], 1 }
 0x411   :  { %303 = vsyncpa [#allocation4], 1 }

</bundles_post_ra>
